<compile_context>
chip_gen: v7x
topology: tpu7x:2x2x1
jax: 0.10.0
libtpu: 0.0.40
codegen_flags: <defaults>
</compile_context>

<pallas_src>
import functools

import jax
import jax.numpy as jnp
from jax.experimental import pallas as pl
from jax.experimental.pallas import tpu as pltpu


def _adain_kernel(scale_ref, bias_ref, x_ref, o_ref, *, hw):
    # scale_ref / bias_ref: (1, TILE_C, 1)
    # x_ref / o_ref:        (1, TILE_C, HW)
    x = x_ref[0]                                             # (TILE_C, HW)

    # One-pass per-channel statistics over the spatial (lane) axis.
    sum_x = jnp.sum(x, axis=-1, keepdims=True)               # (TILE_C, 1)
    sum_x2 = jnp.sum(x * x, axis=-1, keepdims=True)          # (TILE_C, 1)
    mean = sum_x * jnp.float32(1.0 / hw)
    # Unbiased variance (torch.Tensor.std default, ddof=1):
    #   var = (sum(x^2) - hw*mean^2) / (hw - 1)
    var = (sum_x2 - mean * sum_x) * jnp.float32(1.0 / (hw - 1))
    var = jnp.maximum(var, 0.0)                              # guard cancellation
    # eps added to std (not inside sqrt) to match the PyTorch module exactly.
    std = jnp.sqrt(var) + jnp.float32(1e-8)

    # Per-channel reciprocal: operates on a tiny (TILE_C, 1) tensor, so exact
    # precision is essentially free (approx=True would risk the 1e-4 tolerance).
    inv = pl.reciprocal(std, approx=False)                   # (TILE_C, 1)

    # Fold normalize + modulate into one FMA pass over the (TILE_C, HW) tile.
    a = scale_ref[0] * inv                                   # (TILE_C, 1)
    b = bias_ref[0] - mean * a                               # (TILE_C, 1)
    o_ref[0] = x * a + b


def _choose_tile_c(c, hw, target_block_bytes=2 * 1024 * 1024):
    """Largest channel tile keeping one f32 x-block under target_block_bytes.

    Prefers a tile that divides C evenly and is a multiple of 8 (sublane rule);
    falls back to a ragged last block (Pallas masks the edge write) otherwise.
    """
    if c * hw * 4 <= target_block_bytes:
        return c
    cap = max(8, (target_block_bytes // (hw * 4)) // 8 * 8)
    for t in range(cap, 7, -8):
        if c % t == 0:
            return t
    return min(c, cap)


def adaptive_instance_norm(x, style, w_scale, b_scale, w_bias, b_bias):
    """x: (B, C, H, W) f32, style: (B, S) f32.
    w_scale/w_bias: (C, S) PyTorch-layout Linear weights; b_*: (C,)."""
    b, c, h, w = x.shape
    hw = h * w
    assert hw > 1, "unbiased std (ddof=1) requires H*W > 1"

    # Hoisted style projections (fc_scale / fc_bias) — tiny GEMMs done once by
    # XLA for the whole batch; shaped (B, C, 1) so channels land on sublanes.
    scale = (style @ w_scale.T + b_scale).reshape(b, c, 1).astype(jnp.float32)
    bias = (style @ w_bias.T + b_bias).reshape(b, c, 1).astype(jnp.float32)

    x_flat = x.reshape(b, c, hw)
    tile_c = _choose_tile_c(c, hw)
    grid = (b, pl.cdiv(c, tile_c))

    kernel = functools.partial(_adain_kernel, hw=hw)

    cost = pl.CostEstimate(
        flops=8 * b * c * hw,            # reductions + fused x*a+b
        transcendentals=b * c,           # sqrt / reciprocal per channel
        bytes_accessed=2 * b * c * hw * 4 + 2 * b * c * 4,
    )

    out = pl.pallas_call(
        kernel,
        out_shape=jax.ShapeDtypeStruct((b, c, hw), jnp.float32),
        grid_spec=pltpu.PrefetchScalarGridSpec(
            num_scalar_prefetch=0,
            grid=grid,
            in_specs=[
                pl.BlockSpec((1, tile_c, 1), lambda bi, ci: (bi, ci, 0)),   # scale
                pl.BlockSpec((1, tile_c, 1), lambda bi, ci: (bi, ci, 0)),   # bias
                pl.BlockSpec((1, tile_c, hw), lambda bi, ci: (bi, ci, 0)),  # x
            ],
            out_specs=pl.BlockSpec((1, tile_c, hw), lambda bi, ci: (bi, ci, 0)),
        ),
        compiler_params=pltpu.CompilerParams(
            dimension_semantics=("parallel", "parallel"),
            # Explicit scoped-VMEM limit: safe on v7x (64 MiB physical) while
            # comfortably above the ~8 MiB this tiling actually pipelines.
            vmem_limit_bytes=48 * 1024 * 1024,
        ),
        cost_estimate=cost,
    )(scale, bias, x_flat)

    return out.reshape(b, c, h, w)


def _reference(x, style, w_scale, b_scale, w_bias, b_bias):
    b, c, h, w = x.shape
    scale = (style @ w_scale.T + b_scale).reshape(b, c, 1, 1)
    bias = (style @ w_bias.T + b_bias).reshape(b, c, 1, 1)
    mean = x.mean(axis=(2, 3), keepdims=True)
    std = x.std(axis=(2, 3), keepdims=True, ddof=1) + 1e-8
    return (x - mean) / std * scale + bias


if __name__ == "__main__":
    B, C, H, W = 2, 4, 16, 16
    STYLE_DIM = 8

    key = jax.random.PRNGKey(0)
    kx, ks, kw1, kb1, kw2, kb2 = jax.random.split(key, 6)

    x = jax.random.normal(kx, (B, C, H, W), dtype=jnp.float32)
    style = jax.random.normal(ks, (B, STYLE_DIM), dtype=jnp.float32)

    # Deterministic Linear params (PyTorch-style uniform(-1/sqrt(fan_in), ...)).
    bound = 1.0 / (STYLE_DIM ** 0.5)
    w_scale = jax.random.uniform(kw1, (C, STYLE_DIM), jnp.float32, -bound, bound)
    b_scale = jax.random.uniform(kb1, (C,), jnp.float32, -bound, bound)
    w_bias = jax.random.uniform(kw2, (C, STYLE_DIM), jnp.float32, -bound, bound)
    b_bias = jax.random.uniform(kb2, (C,), jnp.float32, -bound, bound)

    out = adaptive_instance_norm(x, style, w_scale, b_scale, w_bias, b_bias)
    out = jax.block_until_ready(out)

    ref = _reference(x, style, w_scale, b_scale, w_bias, b_bias)
    assert out.shape == (B, C, H, W)
    assert jnp.allclose(out, ref, atol=1e-4, rtol=1e-4), "mismatch vs reference"

    print("KERNEL_OK")
</pallas_src>

<mosaic_0001>
module attributes {stable_mosaic.version = 11 : i64} {
  func.func @_adain_kernel(%arg0: i32, %arg1: i32, %arg2: memref<1x4x1xf32, #tpu.memory_space<vmem>>, %arg3: memref<1x4x1xf32, #tpu.memory_space<vmem>>, %arg4: memref<1x4x256xf32, #tpu.memory_space<vmem>>, %arg5: memref<1x4x256xf32, #tpu.memory_space<vmem>>) attributes {dimension_semantics = [#tpu.dimension_semantics<parallel>, #tpu.dimension_semantics<parallel>], iteration_bounds = array<i64: 2, 1>, scalar_prefetch = 0 : i64, scratch_operands = 0 : i64, tpu.core_type = #tpu.core_type<tc>, window_params = [{transform_indices = @transform_0, window_bounds = array<i64: 1, 4, 1>}, {transform_indices = @transform_1, window_bounds = array<i64: 1, 4, 1>}, {transform_indices = @transform_2, window_bounds = array<i64: 1, 4, 256>}, {transform_indices = @transform_3, window_bounds = array<i64: 1, 4, 256>}]} {
    %c0 = arith.constant 0 : index
    %c0_0 = arith.constant 0 : index
    %c0_1 = arith.constant 0 : index
    %0 = vector.load %arg4[%c0, %c0_0, %c0_1] : memref<1x4x256xf32, #tpu.memory_space<vmem>>, vector<1x4x256xf32>
    %1 = vector.shape_cast %0 : vector<1x4x256xf32> to vector<4x256xf32>
    %cst = arith.constant dense<0.000000e+00> : vector<4xf32>
    %2 = vector.multi_reduction <add>, %1, %cst [1] : vector<4x256xf32> to vector<4xf32>
    %3 = vector.shape_cast %2 : vector<4xf32> to vector<4x1xf32>
    %4 = arith.mulf %1, %1 : vector<4x256xf32>
    %cst_2 = arith.constant dense<0.000000e+00> : vector<4xf32>
    %5 = vector.multi_reduction <add>, %4, %cst_2 [1] : vector<4x256xf32> to vector<4xf32>
    %6 = vector.shape_cast %5 : vector<4xf32> to vector<4x1xf32>
    %cst_3 = arith.constant 3.906250e-03 : f32
    %7 = vector.broadcast %cst_3 : f32 to vector<4x1xf32>
    %8 = arith.mulf %3, %7 : vector<4x1xf32>
    %9 = arith.mulf %8, %3 : vector<4x1xf32>
    %10 = arith.subf %6, %9 : vector<4x1xf32>
    %cst_4 = arith.constant 0.00392156886 : f32
    %11 = vector.broadcast %cst_4 : f32 to vector<4x1xf32>
    %12 = arith.mulf %10, %11 : vector<4x1xf32>
    %cst_5 = arith.constant 0.000000e+00 : f32
    %13 = vector.broadcast %cst_5 : f32 to vector<4x1xf32>
    %14 = arith.maximumf %12, %13 : vector<4x1xf32>
    %15 = math.sqrt %14 : vector<4x1xf32>
    %cst_6 = arith.constant 9.99999993E-9 : f32
    %16 = vector.broadcast %cst_6 : f32 to vector<4x1xf32>
    %17 = arith.addf %15, %16 : vector<4x1xf32>
    %18 = tpu.reciprocal %17 : vector<4x1xf32> -> vector<4x1xf32>
    %c0_7 = arith.constant 0 : index
    %c0_8 = arith.constant 0 : index
    %c0_9 = arith.constant 0 : index
    %19 = vector.load %arg2[%c0_7, %c0_8, %c0_9] : memref<1x4x1xf32, #tpu.memory_space<vmem>>, vector<1x4x1xf32>
    %20 = vector.shape_cast %19 : vector<1x4x1xf32> to vector<4x1xf32>
    %21 = arith.mulf %20, %18 : vector<4x1xf32>
    %c0_10 = arith.constant 0 : index
    %c0_11 = arith.constant 0 : index
    %c0_12 = arith.constant 0 : index
    %22 = vector.load %arg3[%c0_10, %c0_11, %c0_12] : memref<1x4x1xf32, #tpu.memory_space<vmem>>, vector<1x4x1xf32>
    %23 = vector.shape_cast %22 : vector<1x4x1xf32> to vector<4x1xf32>
    %24 = arith.mulf %8, %21 : vector<4x1xf32>
    %25 = arith.subf %23, %24 : vector<4x1xf32>
    %26 = vector.broadcast %21 : vector<4x1xf32> to vector<4x256xf32>
    %27 = arith.mulf %1, %26 : vector<4x256xf32>
    %28 = vector.broadcast %25 : vector<4x1xf32> to vector<4x256xf32>
    %29 = arith.addf %27, %28 : vector<4x256xf32>
    %c0_13 = arith.constant 0 : index
    %c0_14 = arith.constant 0 : index
    %c0_15 = arith.constant 0 : index
    %30 = vector.load %arg5[%c0_13, %c0_14, %c0_15] : memref<1x4x256xf32, #tpu.memory_space<vmem>>, vector<1x4x256xf32>
    %31 = vector.shape_cast %30 : vector<1x4x256xf32> to vector<4x256xf32>
    %32 = vector.shape_cast %29 : vector<4x256xf32> to vector<1x4x256xf32>
    tpu.vector_store %arg5[%c0_13, %c0_14, %c0_15], %32 {strides = array<i32>} : memref<1x4x256xf32, #tpu.memory_space<vmem>>, vector<1x4x256xf32>,
    return
  }
  func.func @transform_0(%arg0: i32, %arg1: i32) -> (i32, i32, i32) {
    %c0_i32 = arith.constant 0 : i32
    %c0_i32_0 = arith.constant 0 : i32
    return %arg0, %arg1, %c0_i32 : i32, i32, i32
  }
  func.func @transform_1(%arg0: i32, %arg1: i32) -> (i32, i32, i32) {
    %c0_i32 = arith.constant 0 : i32
    %c0_i32_0 = arith.constant 0 : i32
    return %arg0, %arg1, %c0_i32 : i32, i32, i32
  }
  func.func @transform_2(%arg0: i32, %arg1: i32) -> (i32, i32, i32) {
    %c0_i32 = arith.constant 0 : i32
    %c0_i32_0 = arith.constant 0 : i32
    return %arg0, %arg1, %c0_i32 : i32, i32, i32
  }
  func.func @transform_3(%arg0: i32, %arg1: i32) -> (i32, i32, i32) {
    %c0_i32 = arith.constant 0 : i32
    %c0_i32_0 = arith.constant 0 : i32
    return %arg0, %arg1, %c0_i32 : i32, i32, i32
  }
}

</mosaic_0001>

<bundles_post_ra>
// kernel: tpu_custom_call.1
= control target key start
LH: loop header
LB: loop body
LE: loop exit
PB: predicated region body
PF: predicated region fallthrough
CT: control target
= control target key end

     0   :  { %8 = vsyncpa [#allocation3], 0  ;;  %s750_s0 = inlined_call_operand.vmem [shape: f32[2,4,1], index: 0, kind: input, shape index: {}]   ;;  %s751_s1 = inlined_call_operand.vmem [shape: f32[2,4,1], index: 1, kind: input, shape index: {}]   ;;  %s752_s2 = inlined_call_operand.vmem [shape: f32[2,4,256], index: 2, kind: input, shape index: {}]   ;;  %s753_s3 = inlined_call_operand.hbm [shape: f32[2,4,256], index: 3, kind: output, shape index: {}]  }
   0x1   :  { %10 = vsyncpa [#allocation3 + $0x1], 0  ;;  %s628_s12 = smov 0   ;;  %s630_s13 = smov 0  }
   0x2   :  { %s632_s14 = smov 0   ;;  %s634_s15 = smov 0  }
   0x3   :  { %s636_s16 = smov 0   ;;  %s638_s17 = smov 0  }
   0x4 LB: > { %s444_s18 = sadd.s32 4294967295, %s603_s17   ;;  %s445_s19 = sadd.s32 4294967294, %s603_s17   ;;  %s603_s17 = sphi %s638_s17, %s16_s17   ;;  %s599_s16 = sphi %s636_s16, %s760_s16   ;;  %s595_s15 = sphi %s634_s15, %s759_s15   ;;  %s591_s14 = sphi %s632_s14, %s758_s14   ;;  %s587_s13 = sphi %s630_s13, %s757_s13   ;;  %s583_s12 = sphi %s628_s12, %s756_s12  }
   0x5   : > { %s28_s20 = sadd.s32 1, %s599_s16  ;;  %s121_s21 = sadd.s32 1, %s591_s14 }
   0x6   : > { %p30_p0 = scmp.ge.s32.totalorder %s28_s20, 2  ;;  %p131_p1 = scmp.ne.s32.totalorder %s591_s14, %s587_s13 }
   0x7   : > { %p132_p2 = scmp.eq.s32.totalorder %s444_s18, 1  ;;  %p137_p3 = scmp.ne.s32.totalorder %s587_s13, %s583_s12 }
   0x8   : > { %s762_s20 = smov (%p30_p0, %s28_s20), 0  ;;  %p138_p5 = scmp.eq.s32.totalorder %s445_s19, 1 }
   0x9   : > { %p668_p4 = por %p132_p2, %p131_p1  ;;  %s116_s23 = ssub.s32 %s599_s16, %s762_s20 }
   0xa   : > { %p448_p6 = scmp.ge.s32.totalorder %s603_s17, 1  ;;  %p119_p7 = scmp.eq.s32.totalorder %s116_s23, 0 }
   0xb   : > { %p675_p8 = por %p138_p5, %p137_p3  ;;  %p188_p9 = scmp.lt.s32.totalorder %s603_s17, 3 }
   0xc   : > { %s681_s25 = scalar_select %p119_p7, %s591_s14, %s121_s21  }
   0xd   : > { %p189_p10 = pnand %p448_p6, %p188_p9 }
   0xe   : > { %p230_p11 = scmp.lt.s32.totalorder (!%p189_p10), %s595_s15, 1  ;;  %vm257_vm0 = vcmask (!%p189_p10), 1043456   ;;  %v605_v10 = vmov (!%p189_p10), 0   ;;  %v606_v30 = vmov (!%p189_p10), 839922192   ;;  %v298_v32 = vlaneseq (!%p189_p10)  ;;  %s227_s11 = sand.u32 (!%p189_p10), 1, %s587_s13  }
   0xf   : > { %192 = sbr.rel (%p189_p10) target bundleno = 364 (0x16c), region = 32  ;;  %518 = vset.pattern.permute.xlu1 (!%p189_p10), %v605_v10  ;;  %519 = vset.pattern.permute.xlu0 (!%p189_p10), %v605_v10  ;;  %v296_v31 = vunpack.c.l.s4 (!%p189_p10), %v606_v30  ;;  %s449_s18 = sshll.u32 (!%p189_p10), %s227_s11, 3 }
  0x10   : > { %v299_v34 = vshrl.u32 (!%p189_p10), %v298_v32, 7  ;;  %s460_s19 = sshll.u32 (!%p189_p10), %s595_s15, 7  ;;  %s229_s21 = scalar_lea.vmem (!%p189_p10), [#allocation2], %s449_s18 }
  0x11   : > { %v297_v33 = vunpack.c.0.s8 (!%p189_p10), %v296_v31  ;;  %s335_s23 = sshll.u32 (!%p189_p10), %s229_s21, 4  ;;  %s703_s28 = scalar_lea.hbm (!%p189_p10), %s753_s3, %s460_s19  ;;  %s705_s23 = int_to_ptr.vmem [resolvable:$true] %s335_s23 }
  0x12   : > { %s319_s29 = scalar_lea.sflag (!%p189_p10), [#allocation3], %s227_s11 }
  0x13   : > { %v300_v35 = vsub.s32 (!%p189_p10), %v297_v33, %v299_v34 }
  0x16   : > { %s685_s26 = scalar_select %p230_p11, %s595_s15, 1 }
  0x17   : > { %s607_s15 = smov [#allocation2]  }
  0x18   : > { %s459_s27 = sshll.u32 %s685_s26, 3  ;;  %s450_s4 = sshll.u32 %s685_s26, 2 }
  0x19   : > { %s252_s30 = scalar_lea.vmem %s752_s2, %s459_s27  ;;  %s236_s7 = scalar_lea.vmem %s750_s0, %s450_s4 }
  0x1a   : > { %v253_v0 = vld [vmem:[%s252_s30] sm:$0xff]  ;;  %s243_s10 = scalar_lea.vmem %s751_s1, %s450_s4  ;;  %s525_s30 = scalar_lea.vmem %s705_s23, 128 }
  0x1b   : > { %v255_v1 = vcombine.high %v253_v0, %v253_v0  ;;  %v258_v2 = vsel %vm257_vm0, %v253_v0, 0.0  ;;  %v263_v3 = vmul.f32 %v253_v0, %v253_v0  ;;  %v286_v24 = vld [vmem:[%s236_s7] sm:$0xf]  ;;  %p526_p12 = scmp.ne.s32.totalorder %s705_s23, %s525_s30  ;;  %s529_s4 = sshll.u32 %s607_s15, 4  ;;  %s530_s4 = int_to_ptr.vmem [resolvable:$false] %s529_s4 }
  0x1c   : > { %v288_v27 = vld [vmem:[%s243_s10] sm:$0xf]  ;;  %s531_s5 = scalar_lea.vmem %s530_s4, 256  ;;  %p532_p1 = scmp.lt.s32.totalorder %s705_s23, %s530_s4 }
  0x1d   : > { %v259_v4 = vsel %vm257_vm0, %v255_v1, 0.0  ;;  %v265_v5 = vcombine.high %v263_v3, %v263_v3  ;;  %v267_v6 = vsel %vm257_vm0, %v263_v3, 0.0  ;;  %p527_p13 = pnand %p526_p12, %p668_p4  ;;  %p533_p2 = scmp.lt.s32.totalorder %s531_s5, %s525_s30 }
  0x1e   : > { %v260_v7 = vadd.f32 %v259_v4, %v258_v2 }
  0x1f   : > { %v268_v8 = vsel %vm257_vm0, %v265_v5, 0.0  ;;  %p528_p0 = pneg %p527_p13  ;;  %p534_p3 = por %p533_p2, %p532_p1 }
  0x20   : > { %261 = vadd.xlane.f32.xlu0 %v260_v7  ;;  %v269_v9 = vadd.f32 %v268_v8, %v267_v6 }
  0x21   : > { %p535_p5 = pnand %p534_p3, %p528_p0 }
  0x24   : > { %270 = vadd.xlane.f32.xlu0 %v269_v9 }
  0xad   : > { %v262_v11 = vpop.xlane.xlu0 %261 }
  0xae   : > { %v272_v12 = vmul.f32 0.00390625, %v262_v11 }
  0xb0   : > { %v273_v13 = vmul.f32 %v272_v12, %v262_v11 }
  0xb1   : > { %v271_v14 = vpop.xlane.xlu0 %270 }
  0xb2   : > { %v274_v15 = vsub.f32 %v271_v14, %v273_v13 }
  0xb4   : > { %v275_v16 = vmul.f32 0.003921569, %v274_v15 }
  0xb6   : > { %v276_v17 = vmax.f32 %v275_v16, 0.0 }
  0xb8   : > { %521 = vrsqrt.f32 %v276_v17  ;;  %vm279_vm1 = vcmp.eq.f32.partialorder %v276_v17, inf  ;;  %v282_v20 = vand.u32 2147483648, %v276_v17  ;;  %vm281_vm2 = vcmp.eq.f32.partialorder %v276_v17, 0.0 }
  0xc2   : > { %v522_v18 = vpop.eup %521 }
  0xc3   : > { %v278_v19 = vmul.f32 %v522_v18, %v276_v17 }
  0xc5   : > { %v280_v21 = vsel %vm279_vm1, %v276_v17, %v278_v19 }
  0xc6   : > { %v283_v22 = vsel %vm281_vm2, %v282_v20, %v280_v21 }
  0xc7   : > { %v284_v23 = vadd.f32 1e-08, %v283_v22 }
  0xc9   : > { %523 = vrcp.f32 %v284_v23 }
  0xd3   : > { %v524_v25 = vpop.eup %523 }
  0xd4   : > { %v287_v26 = vmul.f32 %v524_v25, %v286_v24 }
  0xd6   : > { %293 = vperm.xlu1 %518, %v287_v26   ;;  %v289_v28 = vmul.f32 %v287_v26, %v272_v12 }
  0xd8   : > { %v290_v29 = vsub.f32 %v288_v27, %v289_v28 }
  0xda   : > { %306 = vperm.xlu1 %518, %v290_v29  }
 0x155   : > { %v294_v36 = vpop.permute.xlu1 %293 }
 0x156   : > { %v301_v37 = vrot.slane %v294_v36, %v300_v35 }
 0x158   : > { %v303_v39 = vmul.f32 %v301_v37, %v253_v0 }
 0x159   : > { %v307_v38 = vpop.permute.xlu1 %306 }
 0x15a   : > { %v314_v40 = vrot.slane %v307_v38, %v300_v35 }
 0x15c   : > { %v316_v41 = vadd.f32 %v314_v40, %v303_v39 }
 0x15e   : > { %317 = vst [vmem:[%s229_s21] sm:$0xff] %v316_v41 }
 0x15f   : > { %538 = shalt.err (!%p535_p5)
}
 0x160   : > { %s539_s6 = scalar_lea.hbm %s703_s28, 128  ;;  %s543_s9 = scalar_lea.hbm %s753_s3, 256 }
 0x161   : > { %p540_p6 = scmp.ne.s32.totalorder %s703_s28, %s539_s6  ;;  %p544_p10 = scmp.lt.u32.totalorder %s703_s28, %s753_s3 }
 0x162   : > { %p545_p11 = scmp.lt.u32.totalorder %s543_s9, %s539_s6  ;;  %p547_p13 = scmp.lt.u32.totalorder %s539_s6, %s703_s28 }
 0x163   : > { %p541_p7 = pnand %p540_p6, %p668_p4 }
 0x164   : > { %p546_p12 = por %p545_p11, %p544_p10 }
 0x165   : > { %p542_p9 = pneg %p541_p7 }
 0x166   : > { %p548_p0 = por %p547_p13, %p546_p12 }
 0x168   : > { %p549_p1 = pnand %p548_p0, %p542_p9 }
 0x16a   : > { %552 = shalt.err (!%p549_p1)
}
 0x16b   : > { %461 = dma.vmem_to_hbm [thread:$0]  (%p668_p4), %s705_s23, 128, %s703_s28, %s319_s29  }
 0x16c PF: > { %p467_p2 = scmp.ge.s32.totalorder %s603_s17, 2  ;;  %s347_s18 = sand.u32 1, %s583_s12  }
 0x16d   : > { %s348_s19 = scalar_lea.sflag [#allocation3], %s347_s18 }
 0x16e   : > { %p464_p3 = pnand %p467_p2, %p675_p8 }
 0x170   : > { %578 = dma.done.wait (!%p464_p3), %s348_s19, 128  }
 0x171   : > { %580 = vsyncadd (!%p464_p3), %s348_s19, 4294967168  ;;  %s16_s17 = sadd.s32 1, %s603_s17   ;;  %s756_s12 = smov %s587_s13 }
 0x172   : > { %p13_p5 = scmp.ge.s32.totalorder %s16_s17, 4   ;;  %s757_s13 = smov %s591_s14 }
 0x173   : > { %s758_s14 = smov %s681_s25  ;;  %s759_s15 = smov %s599_s16 }
 0x174   : > { %s760_s16 = smov %s762_s20  ;;  %15 = sbr.rel (!%p13_p5) target bundleno = 4 (0x4), region = 73 }
 0x17b   :  { %353 = vsyncpa [#allocation3], 1 }
 0x17c   :  { %355 = vsyncpa [#allocation3 + $0x1], 1 }

</bundles_post_ra>
